<compile_context>
chip_gen: v6e
topology: v6e:2x2x1
jax: 0.10.0
libtpu: 0.0.40
codegen_flags: <defaults>
</compile_context>

<pallas_src>
import functools

import jax
import jax.numpy as jnp
from jax.experimental import pallas as pl
from jax.experimental.pallas import tpu as pltpu


# ----------------------------- parameters ---------------------------------
def init_params(key, hid_channels=16):
    """Deterministic synthetic weights.  BatchNorm is folded (eval mode)."""
    ks = jax.random.split(key, 12)
    eps = 1e-5
    cin = 4 * 2 + hid_channels

    w1 = 0.2 * jax.random.normal(ks[0], (hid_channels, cin), jnp.float32)
    g1 = 1.0 + 0.1 * jax.random.normal(ks[1], (hid_channels,), jnp.float32)
    b1 = 0.1 * jax.random.normal(ks[2], (hid_channels,), jnp.float32)
    rm1 = 0.1 * jax.random.normal(ks[3], (hid_channels,), jnp.float32)
    rv1 = 0.5 + jax.random.uniform(ks[4], (hid_channels,), jnp.float32)

    w2 = 0.2 * jax.random.normal(ks[5], (hid_channels, hid_channels), jnp.float32)
    g2 = 1.0 + 0.1 * jax.random.normal(ks[6], (hid_channels,), jnp.float32)
    b2 = 0.1 * jax.random.normal(ks[7], (hid_channels,), jnp.float32)
    rm2 = 0.1 * jax.random.normal(ks[8], (hid_channels,), jnp.float32)
    rv2 = 0.5 + jax.random.uniform(ks[9], (hid_channels,), jnp.float32)

    w3 = 0.2 * jax.random.normal(ks[10], (4, hid_channels), jnp.float32)
    b3 = 0.1 * jax.random.normal(ks[11], (4,), jnp.float32)

    s1 = g1 / jnp.sqrt(rv1 + eps)          # fold BN1 (eval / running stats)
    s2 = g2 / jnp.sqrt(rv2 + eps)          # fold BN2 (eval / running stats)
    w1f = w1 * s1[:, None]
    return {
        # first 1x1 conv split into column blocks (input = [cov_xy, var_x, hid])
        "w1_cov": w1f[:, 0:4],
        "w1_var": w1f[:, 4:8],
        "w1_hid": w1f[:, 8:],
        "c1": (b1 - rm1 * s1)[:, None],
        "w2": w2 * s2[:, None],
        "c2": (b2 - rm2 * s2)[:, None],
        "w3": w3,
        "c3": b3[:, None],
    }


# PyTorch F.interpolate(bilinear, align_corners=False) as a 1-D linear matrix.
def _interp_matrix(out_size, in_size):
    scale = in_size / out_size
    dst = jnp.arange(out_size, dtype=jnp.float32)
    src = jnp.maximum((dst + 0.5) * scale - 0.5, 0.0)
    i0 = jnp.minimum(jnp.floor(src).astype(jnp.int32), in_size - 1)
    frac = src - i0.astype(jnp.float32)
    i1 = jnp.minimum(i0 + 1, in_size - 1)
    m = jnp.zeros((out_size, in_size), jnp.float32)
    m = m.at[jnp.arange(out_size), i0].add(1.0 - frac)
    m = m.at[jnp.arange(out_size), i1].add(frac)
    return m


# -------------------------- stage 1: base-res kernel -----------------------
def _base_kernel(xy_ref, hid_ref, w1c_ref, w1v_ref, w1h_ref, c1_ref,
                 w2_ref, c2_ref, w3_ref, c3_ref, ab_ref, hs_ref, *, tb, w):
    """One (frame, row-tile).  xy_ref holds the haloed flat window:
    (1, 1, 8, tb*w + 2*(w+1)) with channels [src(3), src_mean, fgr(3), pha]."""
    f32 = jnp.float32
    nt = tb * w            # flat tile size
    L = nt + 2 * w         # horizontal-sum length (covers 1 halo row each side)

    # Hoisted column masks for the horizontal box pass (review: hoist masks).
    colq = jax.lax.broadcasted_iota(jnp.int32, (1, L), 1) % w
    mask_l = colq != 0            # left tap invalid at column 0
    mask_r = colq != (w - 1)      # right tap invalid at last column

    # Three horizontally shifted REF-level loads (no 16-channel concat value).
    a0 = xy_ref[0, 0, :, 0:L]          # (8, L)  left  tap
    a1 = xy_ref[0, 0, :, 1:1 + L]      # (8, L)  centre
    a2 = xy_ref[0, 0, :, 2:2 + L]      # (8, L)  right tap

    x0, y0 = a0[0:4], a0[4:8]
    x1, y1 = a1[0:4], a1[4:8]
    x2, y2 = a2[0:4], a2[4:8]

    # Horizontal sums into VMEM scratch (16, L): [x, y] then [x*y, x*x].
    hs_ref[0:8, :] = (jnp.where(mask_l, a0, 0.0) + a1
                      + jnp.where(mask_r, a2, 0.0))
    prod_xy = (jnp.where(mask_l, x0 * y0, 0.0) + x1 * y1
               + jnp.where(mask_r, x2 * y2, 0.0))
    prod_xx = (jnp.where(mask_l, x0 * x0, 0.0) + x1 * x1
               + jnp.where(mask_r, x2 * x2, 0.0))
    hs_ref[8:16, :] = jnp.concatenate([prod_xy, prod_xx], axis=0)

    # Vertical sum (zero padding / neighbour rows come from the window halo).
    M = (hs_ref[:, 0:nt] + hs_ref[:, w:w + nt]
         + hs_ref[:, 2 * w:2 * w + nt]) * f32(1.0 / 9.0)      # (16, nt)

    mean_x, mean_y = M[0:4], M[4:8]
    # E[xy]-E[x]E[y] / E[x^2]-E[x]^2: may go slightly negative from cancellation,
    # matching the PyTorch box-filter formulation (nothing divides by it).
    cov_xy = M[8:12] - mean_x * mean_y
    var_x = M[12:16] - mean_x * mean_x

    hid = hid_ref[0, 0]                  # (hid_ch, nt)
    pre1 = (jnp.dot(w1c_ref[...], cov_xy, preferred_element_type=f32)
            + jnp.dot(w1v_ref[...], var_x, preferred_element_type=f32)
            + jnp.dot(w1h_ref[...], hid, preferred_element_type=f32)
            + c1_ref[...])
    t1 = jnp.maximum(pre1, 0.0)
    t2 = jnp.maximum(
        jnp.dot(w2_ref[...], t1, preferred_element_type=f32) + c2_ref[...], 0.0)
    A = jnp.dot(w3_ref[...], t2, preferred_element_type=f32) + c3_ref[...]   # (4, nt)
    b = mean_y - A * mean_x                                                  # (4, nt)
    ab_ref[0, 0] = jnp.concatenate([A, b], axis=0).astype(ab_ref.dtype)      # bf16 (8, nt)


# -------------------------- stage 2: fine-res kernel ------------------------
def _fine_kernel(ab_ref, uh_ref, uw_ref, fine_ref, fgr_ref, pha_ref):
    """One (frame, fine-row-tile).  Separable bilinear upsample of A,b with
    bf16 MXU operands + f32 blend; writes fgr and pha directly (no concat)."""
    f32 = jnp.float32
    bf16 = jnp.bfloat16

    uh = uh_ref[...].astype(bf16)        # (TH, h) row-interp weights for this tile
    uwT = uw_ref[...]                    # (w, W)  bf16 column-interp weights
    # mean of the 3 fine channels is the 4th guidance channel; fine channels
    # themselves are re-read per channel from VMEM to keep live ranges small.
    fine_mean = (fine_ref[0, 0].astype(f32) + fine_ref[0, 1].astype(f32)
                 + fine_ref[0, 2].astype(f32)) * f32(1.0 / 3.0)

    for c in range(4):
        a_rows = jnp.dot(uh, ab_ref[0, c], preferred_element_type=f32)       # (TH, w)
        b_rows = jnp.dot(uh, ab_ref[0, 4 + c], preferred_element_type=f32)   # (TH, w)
        # TODO(synk): for integer fine/base ratios a 2-tap per-phase bilinear
        # (VPU) would replace this dense (w,W) matmul and cut MXU FLOPs ~100x.
        a_up = jnp.dot(a_rows.astype(bf16), uwT, preferred_element_type=f32)  # (TH, W)
        b_up = jnp.dot(b_rows.astype(bf16), uwT, preferred_element_type=f32)  # (TH, W)
        fx = fine_ref[0, c].astype(f32) if c < 3 else fine_mean
        res = a_up * fx + b_up
        if c < 3:
            fgr_ref[0, c] = res.astype(fgr_ref.dtype)
        else:
            pha_ref[0, 0] = res.astype(pha_ref.dtype)


# ------------------------------ tuning helpers ------------------------------
def _device_tuning():
    """(fine row-tile cap, vmem_limit_bytes) per TPU generation."""
    try:
        kind = jax.devices()[0].device_kind.lower()
    except Exception:
        kind = ""
    if "v5" in kind:   # 128-tall MXU, ~820 GB/s HBM: stage 2 is memory bound
        return 128, 32 * 1024 * 1024
    if "v7" in kind:   # 64 MiB physical VMEM per TensorCore
        return 256, 56 * 1024 * 1024
    return 256, 96 * 1024 * 1024        # v6e & default (128 MiB physical VMEM)


def _choose_tile_h(H, cap):
    best = None
    for th in range(16, min(H, cap) + 1, 16):   # prefer multiples of 16 (bf16-safe)
        if H % th == 0:
            best = th
    if best is None:
        for th in range(8, min(H, cap) + 1, 8):
            if H % th == 0:
                best = th
    # TODO(synk): handle ragged H (no multiple-of-8 divisor) via pl.cdiv grid
    # + masked boundary tiles instead of falling back to a whole-image tile.
    return best if best is not None else H


def _choose_base_tile_rows(h, w, max_flat=16384):
    """Largest row count dividing h whose flat tile (rows*w) stays VMEM-friendly."""
    best = 1
    for tb in range(1, h + 1):
        if h % tb == 0 and tb * w <= max_flat:
            best = tb
    return best


def _maybe_buffered(block_shape, index_map, single_buffer):
    """Single-buffer constant inputs (never re-fetched across row tiles)."""
    if single_buffer:
        try:
            return pl.BlockSpec(block_shape, index_map,
                                pipeline_mode=pl.Buffered(1))
        except Exception:   # pipeline_mode / Buffered unavailable on this jax
            pass
    return pl.BlockSpec(block_shape, index_map)


# ------------------------------ wrapper ------------------------------------
def deep_guided_filter_refine(params, fine_src, base_src, base_fgr, base_pha,
                              base_hid, tile_h=None, base_tile_rows=None):
    if fine_src.ndim == 5:   # time series: flatten (B, T) like the PyTorch module
        B, T = fine_src.shape[:2]
        flat = lambda x: x.reshape((B * T,) + x.shape[2:])
        fgr, pha = deep_guided_filter_refine(
            params, flat(fine_src), flat(base_src), flat(base_fgr),
            flat(base_pha), flat(base_hid), tile_h=tile_h,
            base_tile_rows=base_tile_rows)
        return (fgr.reshape((B, T) + fgr.shape[1:]),
                pha.reshape((B, T) + pha.shape[1:]))

    N, _, H, W = fine_src.shape
    _, hid_ch, h, w = base_hid.shape
    P = w + 1
    f32 = jnp.float32
    bf16 = jnp.bfloat16

    # ---- stage 1 inputs: packed [base_x, base_y] flat, zero-padded, row-tiled
    base_src = base_src.astype(f32)
    base_x = jnp.concatenate([base_src, base_src.mean(axis=1, keepdims=True)], axis=1)
    base_y = jnp.concatenate([base_fgr.astype(f32), base_pha.astype(f32)], axis=1)
    xy = jnp.concatenate([base_x, base_y], axis=1).reshape(N, 8, h * w)
    xy_pad = jnp.pad(xy, ((0, 0), (0, 0), (P, P)))

    tb = base_tile_rows if base_tile_rows is not None else _choose_base_tile_rows(h, w)
    assert h % tb == 0, (h, tb)
    n_t = h // tb
    nt = tb * w
    # Haloed flat row-tile windows (cheap static XLA slices of a small array):
    # window t covers flat range [t*nt - P, t*nt + nt + P), i.e. one neighbour
    # row + one element of padding on each side, so each grid step is self
    # contained and stage-1 VMEM is bounded at any base resolution.
    xy_win = jnp.stack(
        [xy_pad[:, :, t * nt: t * nt + nt + 2 * P] for t in range(n_t)], axis=1)
    hid_win = base_hid.astype(f32).reshape(N, hid_ch, n_t, nt).transpose(0, 2, 1, 3)

    base_grid = pltpu.PrefetchScalarGridSpec(
        num_scalar_prefetch=0,
        grid=(N, n_t),
        in_specs=[
            pl.BlockSpec((1, 1, 8, nt + 2 * P), lambda i, t: (i, t, 0, 0)),
            pl.BlockSpec((1, 1, hid_ch, nt), lambda i, t: (i, t, 0, 0)),
            pl.BlockSpec(params["w1_cov"].shape, lambda i, t: (0, 0)),
            pl.BlockSpec(params["w1_var"].shape, lambda i, t: (0, 0)),
            pl.BlockSpec(params["w1_hid"].shape, lambda i, t: (0, 0)),
            pl.BlockSpec(params["c1"].shape, lambda i, t: (0, 0)),
            pl.BlockSpec(params["w2"].shape, lambda i, t: (0, 0)),
            pl.BlockSpec(params["c2"].shape, lambda i, t: (0, 0)),
            pl.BlockSpec(params["w3"].shape, lambda i, t: (0, 0)),
            pl.BlockSpec(params["c3"].shape, lambda i, t: (0, 0)),
        ],
        out_specs=pl.BlockSpec((1, 1, 8, nt), lambda i, t: (i, t, 0, 0)),
        scratch_shapes=[pltpu.VMEM((16, nt + 2 * w), f32)],
    )
    ab_win = pl.pallas_call(
        functools.partial(_base_kernel, tb=tb, w=w),
        out_shape=jax.ShapeDtypeStruct((N, n_t, 8, nt), bf16),
        grid_spec=base_grid,
        compiler_params=pltpu.CompilerParams(
            dimension_semantics=("parallel", "parallel"),
            vmem_limit_bytes=32 * 1024 * 1024),
    )(xy_win, hid_win,
      params["w1_cov"], params["w1_var"], params["w1_hid"], params["c1"],
      params["w2"], params["c2"], params["w3"], params["c3"])

    # (N, n_t, 8, tb*w) -> (N, 8, h, w): tiny bf16 array, cheap XLA reshuffle.
    ab = ab_win.transpose(0, 2, 1, 3).reshape(N, 8, h, w)

    # ---- stage 2: separable bilinear upsample + blend, tiled over fine rows
    cap, vmem_lim = _device_tuning()
    TH = tile_h if tile_h is not None else _choose_tile_h(H, cap)
    assert H % TH == 0, (H, TH)
    Uh = _interp_matrix(H, h)                        # (H, h) f32, bf16-cast in kernel
    UwT = _interp_matrix(W, w).T.astype(bf16)        # (w, W) bf16 MXU operand
    out_dtype = (fine_src.dtype
                 if jnp.issubdtype(fine_src.dtype, jnp.floating) else f32)

    def run_fine(single_buffer_consts):
        in_specs = [
            _maybe_buffered((1, 8, h, w), lambda i, t: (i, 0, 0, 0),
                            single_buffer_consts),
            pl.BlockSpec((TH, h), lambda i, t: (t, 0)),
            _maybe_buffered((w, W), lambda i, t: (0, 0), single_buffer_consts),
            pl.BlockSpec((1, 3, TH, W), lambda i, t: (i, 0, t, 0)),
        ]
        fine_grid = pltpu.PrefetchScalarGridSpec(
            num_scalar_prefetch=0,
            grid=(N, H // TH),
            in_specs=in_specs,
            out_specs=[pl.BlockSpec((1, 3, TH, W), lambda i, t: (i, 0, t, 0)),
                       pl.BlockSpec((1, 1, TH, W), lambda i, t: (i, 0, t, 0))],
        )
        return pl.pallas_call(
            _fine_kernel,
            out_shape=(jax.ShapeDtypeStruct((N, 3, H, W), out_dtype),
                       jax.ShapeDtypeStruct((N, 1, H, W), out_dtype)),
            grid_spec=fine_grid,
            compiler_params=pltpu.CompilerParams(
                dimension_semantics=("parallel", "parallel"),
                vmem_limit_bytes=vmem_lim),
        )(ab, Uh, UwT, fine_src)        # fine_src in its native dtype (no XLA upcast)

    try:
        fgr, pha = run_fine(True)
    except Exception:
        # Fallback if pl.Buffered(1) is rejected by this jax/libtpu combo.
        fgr, pha = run_fine(False)
    return fgr, pha


# -------------------------- pure-JAX reference ------------------------------
def _reference(params, fine_src, base_src, base_fgr, base_pha, base_hid):
    f32 = jnp.float32
    fine_src = fine_src.astype(f32)
    base_src = base_src.astype(f32)
    base_fgr = base_fgr.astype(f32)
    base_pha = base_pha.astype(f32)
    base_hid = base_hid.astype(f32)
    N, _, H, W = fine_src.shape
    h, w = base_src.shape[2:]

    def box(x):
        hh, ww = x.shape[2], x.shape[3]
        xp = jnp.pad(x, ((0, 0), (0, 0), (1, 1), (1, 1)))
        acc = jnp.zeros_like(x)
        for i in range(3):
            for j in range(3):
                acc = acc + xp[:, :, i:i + hh, j:j + ww]
        return acc / 9.0

    fine_x = jnp.concatenate([fine_src, fine_src.mean(axis=1, keepdims=True)], axis=1)
    base_x = jnp.concatenate([base_src, base_src.mean(axis=1, keepdims=True)], axis=1)
    base_y = jnp.concatenate([base_fgr, base_pha], axis=1)
    mean_x, mean_y = box(base_x), box(base_y)
    cov_xy = box(base_x * base_y) - mean_x * mean_y
    var_x = box(base_x * base_x) - mean_x * mean_x

    w1 = jnp.concatenate([params["w1_cov"], params["w1_var"], params["w1_hid"]], axis=1)
    feat = jnp.concatenate([cov_xy, var_x, base_hid], axis=1).reshape(N, -1, h * w)
    t1 = jnp.maximum(jnp.einsum("oc,ncp->nop", w1, feat) + params["c1"][None], 0.0)
    t2 = jnp.maximum(jnp.einsum("oc,ncp->nop", params["w2"], t1) + params["c2"][None], 0.0)
    A = (jnp.einsum("oc,ncp->nop", params["w3"], t2) + params["c3"][None]).reshape(N, 4, h, w)
    b = mean_y - A * mean_x

    Uh, Uw = _interp_matrix(H, h), _interp_matrix(W, w)
    up = lambda z: jnp.einsum("Hh,nchw,Ww->ncHW", Uh, z, Uw)
    out = up(A) * fine_x + up(b)
    return out[:, 0:3], out[:, 3:4]


# -------------------------------- main -------------------------------------
if __name__ == "__main__":
    key = jax.random.PRNGKey(0)
    kp, k1, k2, k3, k4, k5 = jax.random.split(key, 6)

    HID = 16
    params = init_params(kp, hid_channels=HID)

    B, h, w, H, W = 2, 16, 16, 32, 32
    fine_src = jax.random.uniform(k1, (B, 3, H, W), jnp.float32)
    base_src = jax.random.uniform(k2, (B, 3, h, w), jnp.float32)
    base_fgr = jax.random.uniform(k3, (B, 3, h, w), jnp.float32)
    base_pha = jax.random.uniform(k4, (B, 1, h, w), jnp.float32)
    base_hid = jax.random.uniform(k5, (B, HID, h, w), jnp.float32)

    # tile_h=16 / base_tile_rows=8 -> multi-tile grids exercising both the
    # fine-row tiling and the stage-1 halo path even at this tiny test size.
    fgr, pha = deep_guided_filter_refine(
        params, fine_src, base_src, base_fgr, base_pha, base_hid,
        tile_h=16, base_tile_rows=8)
    jax.block_until_ready((fgr, pha))

    assert fgr.shape == (B, 3, H, W), fgr.shape
    assert pha.shape == (B, 1, H, W), pha.shape
    assert bool(jnp.isfinite(fgr).all()) and bool(jnp.isfinite(pha).all())

    # Self-check vs a pure-JAX f32 reference (kernel uses bf16 MXU operands for
    # the upsample, hence the loose absolute tolerance).
    ref_fgr, ref_pha = _reference(params, fine_src, base_src, base_fgr,
                                  base_pha, base_hid)
    err_fgr = float(jnp.max(jnp.abs(fgr.astype(jnp.float32) - ref_fgr)))
    err_pha = float(jnp.max(jnp.abs(pha.astype(jnp.float32) - ref_pha)))
    assert err_fgr < 6e-2 and err_pha < 6e-2, (err_fgr, err_pha)

    print("KERNEL_OK")
</pallas_src>

<mosaic_0001>
module attributes {stable_mosaic.version = 11 : i64} {
  func.func @_base_kernel(%arg0: i32, %arg1: i32, %arg2: memref<1x1x8x162xf32, #tpu.memory_space<vmem>>, %arg3: memref<1x1x16x128xf32, #tpu.memory_space<vmem>>, %arg4: memref<16x4xf32, #tpu.memory_space<vmem>>, %arg5: memref<16x4xf32, #tpu.memory_space<vmem>>, %arg6: memref<16x16xf32, #tpu.memory_space<vmem>>, %arg7: memref<16x1xf32, #tpu.memory_space<vmem>>, %arg8: memref<16x16xf32, #tpu.memory_space<vmem>>, %arg9: memref<16x1xf32, #tpu.memory_space<vmem>>, %arg10: memref<4x16xf32, #tpu.memory_space<vmem>>, %arg11: memref<4x1xf32, #tpu.memory_space<vmem>>, %arg12: memref<1x1x8x128xbf16, #tpu.memory_space<vmem>>, %arg13: memref<16x160xf32, #tpu.memory_space<vmem>>) attributes {dimension_semantics = [#tpu.dimension_semantics<parallel>, #tpu.dimension_semantics<parallel>], iteration_bounds = array<i64: 2, 2>, scalar_prefetch = 0 : i64, scratch_operands = 1 : i64, tpu.core_type = #tpu.core_type<tc>, window_params = [{transform_indices = @transform_0, window_bounds = array<i64: 1, 1, 8, 162>}, {transform_indices = @transform_1, window_bounds = array<i64: 1, 1, 16, 128>}, {pipeline_mode = #tpu.pipeline_mode<synchronous>, transform_indices = @transform_2, window_bounds = array<i64: 16, 4>}, {pipeline_mode = #tpu.pipeline_mode<synchronous>, transform_indices = @transform_3, window_bounds = array<i64: 16, 4>}, {pipeline_mode = #tpu.pipeline_mode<synchronous>, transform_indices = @transform_4, window_bounds = array<i64: 16, 16>}, {pipeline_mode = #tpu.pipeline_mode<synchronous>, transform_indices = @transform_5, window_bounds = array<i64: 16, 1>}, {pipeline_mode = #tpu.pipeline_mode<synchronous>, transform_indices = @transform_6, window_bounds = array<i64: 16, 16>}, {pipeline_mode = #tpu.pipeline_mode<synchronous>, transform_indices = @transform_7, window_bounds = array<i64: 16, 1>}, {pipeline_mode = #tpu.pipeline_mode<synchronous>, transform_indices = @transform_8, window_bounds = array<i64: 4, 16>}, {pipeline_mode = #tpu.pipeline_mode<synchronous>, transform_indices = @transform_9, window_bounds = array<i64: 4, 1>}, {transform_indices = @transform_10, window_bounds = array<i64: 1, 1, 8, 128>}]} {
    %0 = tpu.iota {dimensions = array<i32: 1>} : vector<1x160xi32>
    %c16_i32 = arith.constant 16 : i32
    %c0_i32 = arith.constant 0 : i32
    %1 = arith.cmpi eq, %c16_i32, %c0_i32 : i32
    %c1_i32 = arith.constant 1 : i32
    %2 = arith.select %1, %c1_i32, %c16_i32 : i32
    %3 = vector.broadcast %2 : i32 to vector<1x160xi32>
    %4 = arith.remsi %0, %3 : vector<1x160xi32>
    %c0_i32_0 = arith.constant 0 : i32
    %5 = vector.broadcast %c0_i32_0 : i32 to vector<1x160xi32>
    %6 = arith.cmpi ne, %4, %5 : vector<1x160xi32>
    %c0_i32_1 = arith.constant 0 : i32
    %7 = vector.broadcast %c0_i32_1 : i32 to vector<1x160xi32>
    %8 = arith.cmpi slt, %4, %7 : vector<1x160xi32>
    %c0_i32_2 = arith.constant 0 : i32
    %9 = arith.cmpi slt, %2, %c0_i32_2 : i32
    %10 = vector.broadcast %9 : i1 to vector<1x160xi1>
    %11 = vector.broadcast %10 : vector<1x160xi1> to vector<1x160xi1>
    %12 = arith.xori %8, %11 : vector<1x160xi1>
    %13 = arith.andi %12, %6 : vector<1x160xi1>
    %14 = vector.broadcast %2 : i32 to vector<1x160xi32>
    %15 = arith.addi %4, %14 : vector<1x160xi32>
    %16 = arith.select %13, %15, %4 : vector<1x160xi1>, vector<1x160xi32>
    %c0_i32_3 = arith.constant 0 : i32
    %17 = vector.broadcast %c0_i32_3 : i32 to vector<1x160xi32>
    %18 = arith.cmpi ne, %16, %17 : vector<1x160xi32>
    %c15_i32 = arith.constant 15 : i32
    %19 = vector.broadcast %c15_i32 : i32 to vector<1x160xi32>
    %20 = arith.cmpi ne, %16, %19 : vector<1x160xi32>
    %c0 = arith.constant 0 : index
    %c0_4 = arith.constant 0 : index
    %c0_5 = arith.constant 0 : index
    %c0_6 = arith.constant 0 : index
    %21 = vector.load %arg2[%c0, %c0_4, %c0_5, %c0_6] : memref<1x1x8x162xf32, #tpu.memory_space<vmem>>, vector<1x1x8x160xf32>
    %22 = vector.shape_cast %21 : vector<1x1x8x160xf32> to vector<8x160xf32>
    %c0_7 = arith.constant 0 : index
    %c0_8 = arith.constant 0 : index
    %c0_9 = arith.constant 0 : index
    %c1 = arith.constant 1 : index
    %23 = vector.load %arg2[%c0_7, %c0_8, %c0_9, %c1] : memref<1x1x8x162xf32, #tpu.memory_space<vmem>>, vector<1x1x8x160xf32>
    %24 = vector.shape_cast %23 : vector<1x1x8x160xf32> to vector<8x160xf32>
    %c0_10 = arith.constant 0 : index
    %c0_11 = arith.constant 0 : index
    %c0_12 = arith.constant 0 : index
    %c2 = arith.constant 2 : index
    %25 = vector.load %arg2[%c0_10, %c0_11, %c0_12, %c2] : memref<1x1x8x162xf32, #tpu.memory_space<vmem>>, vector<1x1x8x160xf32>
    %26 = vector.shape_cast %25 : vector<1x1x8x160xf32> to vector<8x160xf32>
    %27 = vector.extract_strided_slice %22 {offsets = [0, 0], sizes = [4, 160], strides = [1, 1]} : vector<8x160xf32> to vector<4x160xf32>
    %28 = vector.extract_strided_slice %22 {offsets = [4, 0], sizes = [4, 160], strides = [1, 1]} : vector<8x160xf32> to vector<4x160xf32>
    %29 = vector.extract_strided_slice %24 {offsets = [0, 0], sizes = [4, 160], strides = [1, 1]} : vector<8x160xf32> to vector<4x160xf32>
    %30 = vector.extract_strided_slice %24 {offsets = [4, 0], sizes = [4, 160], strides = [1, 1]} : vector<8x160xf32> to vector<4x160xf32>
    %31 = vector.extract_strided_slice %26 {offsets = [0, 0], sizes = [4, 160], strides = [1, 1]} : vector<8x160xf32> to vector<4x160xf32>
    %32 = vector.extract_strided_slice %26 {offsets = [4, 0], sizes = [4, 160], strides = [1, 1]} : vector<8x160xf32> to vector<4x160xf32>
    %cst = arith.constant 0.000000e+00 : f32
    %33 = vector.shape_cast %18 : vector<1x160xi1> to vector<1x160xi1>
    %34 = vector.broadcast %33 : vector<1x160xi1> to vector<8x160xi1>
    %35 = vector.broadcast %cst : f32 to vector<8x160xf32>
    %36 = arith.select %34, %22, %35 : vector<8x160xi1>, vector<8x160xf32>
    %37 = arith.addf %36, %24 : vector<8x160xf32>
    %cst_13 = arith.constant 0.000000e+00 : f32
    %38 = vector.shape_cast %20 : vector<1x160xi1> to vector<1x160xi1>
    %39 = vector.broadcast %38 : vector<1x160xi1> to vector<8x160xi1>
    %40 = vector.broadcast %cst_13 : f32 to vector<8x160xf32>
    %41 = arith.select %39, %26, %40 : vector<8x160xi1>, vector<8x160xf32>
    %42 = arith.addf %37, %41 : vector<8x160xf32>
    %c0_14 = arith.constant 0 : index
    %c0_15 = arith.constant 0 : index
    %43 = vector.load %arg13[%c0_14, %c0_15] : memref<16x160xf32, #tpu.memory_space<vmem>>, vector<8x160xf32>
    tpu.vector_store %arg13[%c0_14, %c0_15], %42 {strides = array<i32>} : memref<16x160xf32, #tpu.memory_space<vmem>>, vector<8x160xf32>,
    %44 = arith.mulf %27, %28 : vector<4x160xf32>
    %cst_16 = arith.constant 0.000000e+00 : f32
    %45 = vector.shape_cast %18 : vector<1x160xi1> to vector<1x160xi1>
    %46 = vector.broadcast %45 : vector<1x160xi1> to vector<4x160xi1>
    %47 = vector.broadcast %cst_16 : f32 to vector<4x160xf32>
    %48 = arith.select %46, %44, %47 : vector<4x160xi1>, vector<4x160xf32>
    %49 = arith.mulf %29, %30 : vector<4x160xf32>
    %50 = arith.addf %48, %49 : vector<4x160xf32>
    %51 = arith.mulf %31, %32 : vector<4x160xf32>
    %cst_17 = arith.constant 0.000000e+00 : f32
    %52 = vector.shape_cast %20 : vector<1x160xi1> to vector<1x160xi1>
    %53 = vector.broadcast %52 : vector<1x160xi1> to vector<4x160xi1>
    %54 = vector.broadcast %cst_17 : f32 to vector<4x160xf32>
    %55 = arith.select %53, %51, %54 : vector<4x160xi1>, vector<4x160xf32>
    %56 = arith.addf %50, %55 : vector<4x160xf32>
    %57 = arith.mulf %27, %27 : vector<4x160xf32>
    %cst_18 = arith.constant 0.000000e+00 : f32
    %58 = vector.shape_cast %18 : vector<1x160xi1> to vector<1x160xi1>
    %59 = vector.broadcast %58 : vector<1x160xi1> to vector<4x160xi1>
    %60 = vector.broadcast %cst_18 : f32 to vector<4x160xf32>
    %61 = arith.select %59, %57, %60 : vector<4x160xi1>, vector<4x160xf32>
    %62 = arith.mulf %29, %29 : vector<4x160xf32>
    %63 = arith.addf %61, %62 : vector<4x160xf32>
    %64 = arith.mulf %31, %31 : vector<4x160xf32>
    %cst_19 = arith.constant 0.000000e+00 : f32
    %65 = vector.shape_cast %20 : vector<1x160xi1> to vector<1x160xi1>
    %66 = vector.broadcast %65 : vector<1x160xi1> to vector<4x160xi1>
    %67 = vector.broadcast %cst_19 : f32 to vector<4x160xf32>
    %68 = arith.select %66, %64, %67 : vector<4x160xi1>, vector<4x160xf32>
    %69 = arith.addf %63, %68 : vector<4x160xf32>
    %70 = tpu.concatenate %56, %69 in 0 : vector<4x160xf32>, vector<4x160xf32> -> vector<8x160xf32>
    %c8 = arith.constant 8 : index
    %c0_20 = arith.constant 0 : index
    %71 = vector.load %arg13[%c8, %c0_20] : memref<16x160xf32, #tpu.memory_space<vmem>>, vector<8x160xf32>
    tpu.vector_store %arg13[%c8, %c0_20], %70 {strides = array<i32>} : memref<16x160xf32, #tpu.memory_space<vmem>>, vector<8x160xf32>,
    %c0_21 = arith.constant 0 : index
    %c0_22 = arith.constant 0 : index
    %72 = vector.load %arg13[%c0_21, %c0_22] : memref<16x160xf32, #tpu.memory_space<vmem>>, vector<16x128xf32>
    %c0_23 = arith.constant 0 : index
    %c16 = arith.constant 16 : index
    %73 = vector.load %arg13[%c0_23, %c16] : memref<16x160xf32, #tpu.memory_space<vmem>>, vector<16x128xf32>
    %74 = arith.addf %72, %73 : vector<16x128xf32>
    %c0_24 = arith.constant 0 : index
    %c32 = arith.constant 32 : index
    %75 = vector.load %arg13[%c0_24, %c32] : memref<16x160xf32, #tpu.memory_space<vmem>>, vector<16x128xf32>
    %76 = arith.addf %74, %75 : vector<16x128xf32>
    %cst_25 = arith.constant 0.111111112 : f32
    %77 = vector.broadcast %cst_25 : f32 to vector<16x128xf32>
    %78 = arith.mulf %76, %77 : vector<16x128xf32>
    %79 = vector.extract_strided_slice %78 {offsets = [0, 0], sizes = [4, 128], strides = [1, 1]} : vector<16x128xf32> to vector<4x128xf32>
    %80 = vector.extract_strided_slice %78 {offsets = [4, 0], sizes = [4, 128], strides = [1, 1]} : vector<16x128xf32> to vector<4x128xf32>
    %81 = vector.extract_strided_slice %78 {offsets = [8, 0], sizes = [4, 128], strides = [1, 1]} : vector<16x128xf32> to vector<4x128xf32>
    %82 = arith.mulf %79, %80 : vector<4x128xf32>
    %83 = arith.subf %81, %82 : vector<4x128xf32>
    %84 = vector.extract_strided_slice %78 {offsets = [12, 0], sizes = [4, 128], strides = [1, 1]} : vector<16x128xf32> to vector<4x128xf32>
    %85 = arith.mulf %79, %79 : vector<4x128xf32>
    %86 = arith.subf %84, %85 : vector<4x128xf32>
    %c0_26 = arith.constant 0 : index
    %c0_27 = arith.constant 0 : index
    %c0_28 = arith.constant 0 : index
    %c0_29 = arith.constant 0 : index
    %87 = vector.load %arg3[%c0_26, %c0_27, %c0_28, %c0_29] : memref<1x1x16x128xf32, #tpu.memory_space<vmem>>, vector<1x1x16x128xf32>
    %88 = vector.shape_cast %87 : vector<1x1x16x128xf32> to vector<16x128xf32>
    %c0_30 = arith.constant 0 : index
    %c0_31 = arith.constant 0 : index
    %89 = vector.load %arg4[%c0_30, %c0_31] : memref<16x4xf32, #tpu.memory_space<vmem>>, vector<16x4xf32>
    %cst_32 = arith.constant dense<0.000000e+00> : vector<16x128xf32>
    %90 = tpu.matmul %89, %83, %cst_32 {dimension_numbers = #tpu.dot_dimension_numbers<[1], [0], [0], [1], [0, 0, 1, 1], [], []>} : vector<16x4xf32>, vector<4x128xf32>, vector<16x128xf32> -> vector<16x128xf32>
    %c0_33 = arith.constant 0 : index
    %c0_34 = arith.constant 0 : index
    %91 = vector.load %arg5[%c0_33, %c0_34] : memref<16x4xf32, #tpu.memory_space<vmem>>, vector<16x4xf32>
    %cst_35 = arith.constant dense<0.000000e+00> : vector<16x128xf32>
    %92 = tpu.matmul %91, %86, %cst_35 {dimension_numbers = #tpu.dot_dimension_numbers<[1], [0], [0], [1], [0, 0, 1, 1], [], []>} : vector<16x4xf32>, vector<4x128xf32>, vector<16x128xf32> -> vector<16x128xf32>
    %93 = arith.addf %90, %92 : vector<16x128xf32>
    %c0_36 = arith.constant 0 : index
    %c0_37 = arith.constant 0 : index
    %94 = vector.load %arg6[%c0_36, %c0_37] : memref<16x16xf32, #tpu.memory_space<vmem>>, vector<16x16xf32>
    %cst_38 = arith.constant dense<0.000000e+00> : vector<16x128xf32>
    %95 = tpu.matmul %94, %88, %cst_38 {dimension_numbers = #tpu.dot_dimension_numbers<[1], [0], [0], [1], [0, 0, 1, 1], [], []>} : vector<16x16xf32>, vector<16x128xf32>, vector<16x128xf32> -> vector<16x128xf32>
    %96 = arith.addf %93, %95 : vector<16x128xf32>
    %c0_39 = arith.constant 0 : index
    %c0_40 = arith.constant 0 : index
    %97 = vector.load %arg7[%c0_39, %c0_40] : memref<16x1xf32, #tpu.memory_space<vmem>>, vector<16x1xf32>
    %98 = vector.broadcast %97 : vector<16x1xf32> to vector<16x128xf32>
    %99 = arith.addf %96, %98 : vector<16x128xf32>
    %cst_41 = arith.constant 0.000000e+00 : f32
    %100 = vector.broadcast %cst_41 : f32 to vector<16x128xf32>
    %101 = arith.maximumf %99, %100 : vector<16x128xf32>
    %c0_42 = arith.constant 0 : index
    %c0_43 = arith.constant 0 : index
    %102 = vector.load %arg8[%c0_42, %c0_43] : memref<16x16xf32, #tpu.memory_space<vmem>>, vector<16x16xf32>
    %cst_44 = arith.constant dense<0.000000e+00> : vector<16x128xf32>
    %103 = tpu.matmul %102, %101, %cst_44 {dimension_numbers = #tpu.dot_dimension_numbers<[1], [0], [0], [1], [0, 0, 1, 1], [], []>} : vector<16x16xf32>, vector<16x128xf32>, vector<16x128xf32> -> vector<16x128xf32>
    %c0_45 = arith.constant 0 : index
    %c0_46 = arith.constant 0 : index
    %104 = vector.load %arg9[%c0_45, %c0_46] : memref<16x1xf32, #tpu.memory_space<vmem>>, vector<16x1xf32>
    %105 = vector.broadcast %104 : vector<16x1xf32> to vector<16x128xf32>
    %106 = arith.addf %103, %105 : vector<16x128xf32>
    %cst_47 = arith.constant 0.000000e+00 : f32
    %107 = vector.broadcast %cst_47 : f32 to vector<16x128xf32>
    %108 = arith.maximumf %106, %107 : vector<16x128xf32>
    %c0_48 = arith.constant 0 : index
    %c0_49 = arith.constant 0 : index
    %109 = vector.load %arg10[%c0_48, %c0_49] : memref<4x16xf32, #tpu.memory_space<vmem>>, vector<4x16xf32>
    %cst_50 = arith.constant dense<0.000000e+00> : vector<4x128xf32>
    %110 = tpu.matmul %109, %108, %cst_50 {dimension_numbers = #tpu.dot_dimension_numbers<[1], [0], [0], [1], [0, 0, 1, 1], [], []>} : vector<4x16xf32>, vector<16x128xf32>, vector<4x128xf32> -> vector<4x128xf32>
    %c0_51 = arith.constant 0 : index
    %c0_52 = arith.constant 0 : index
    %111 = vector.load %arg11[%c0_51, %c0_52] : memref<4x1xf32, #tpu.memory_space<vmem>>, vector<4x1xf32>
    %112 = vector.broadcast %111 : vector<4x1xf32> to vector<4x128xf32>
    %113 = arith.addf %110, %112 : vector<4x128xf32>
    %114 = arith.mulf %113, %79 : vector<4x128xf32>
    %115 = arith.subf %80, %114 : vector<4x128xf32>
    %116 = tpu.concatenate %113, %115 in 0 : vector<4x128xf32>, vector<4x128xf32> -> vector<8x128xf32>
    %117 = arith.truncf %116 : vector<8x128xf32> to vector<8x128xbf16>
    %c0_53 = arith.constant 0 : index
    %c0_54 = arith.constant 0 : index
    %c0_55 = arith.constant 0 : index
    %c0_56 = arith.constant 0 : index
    %118 = vector.load %arg12[%c0_53, %c0_54, %c0_55, %c0_56] : memref<1x1x8x128xbf16, #tpu.memory_space<vmem>>, vector<1x1x8x128xbf16>
    %119 = vector.shape_cast %118 : vector<1x1x8x128xbf16> to vector<8x128xbf16>
    %120 = vector.shape_cast %117 : vector<8x128xbf16> to vector<1x1x8x128xbf16>
    tpu.vector_store %arg12[%c0_53, %c0_54, %c0_55, %c0_56], %120 {strides = array<i32>} : memref<1x1x8x128xbf16, #tpu.memory_space<vmem>>, vector<1x1x8x128xbf16>,
    return
  }
  func.func @transform_0(%arg0: i32, %arg1: i32) -> (i32, i32, i32, i32) {
    %c0_i32 = arith.constant 0 : i32
    %c0_i32_0 = arith.constant 0 : i32
    %c0_i32_1 = arith.constant 0 : i32
    return %arg0, %arg1, %c0_i32, %c0_i32_0 : i32, i32, i32, i32
  }
  func.func @transform_1(%arg0: i32, %arg1: i32) -> (i32, i32, i32, i32) {
    %c0_i32 = arith.constant 0 : i32
    %c0_i32_0 = arith.constant 0 : i32
    %c0_i32_1 = arith.constant 0 : i32
    return %arg0, %arg1, %c0_i32, %c0_i32_0 : i32, i32, i32, i32
  }
  func.func @transform_2(%arg0: i32, %arg1: i32) -> (i32, i32) {
    %c0_i32 = arith.constant 0 : i32
    %c0_i32_0 = arith.constant 0 : i32
    %c0_i32_1 = arith.constant 0 : i32
    return %c0_i32, %c0_i32_0 : i32, i32
  }
  func.func @transform_3(%arg0: i32, %arg1: i32) -> (i32, i32) {
    %c0_i32 = arith.constant 0 : i32
    %c0_i32_0 = arith.constant 0 : i32
    %c0_i32_1 = arith.constant 0 : i32
    return %c0_i32, %c0_i32_0 : i32, i32
  }
  func.func @transform_4(%arg0: i32, %arg1: i32) -> (i32, i32) {
    %c0_i32 = arith.constant 0 : i32
    %c0_i32_0 = arith.constant 0 : i32
    %c0_i32_1 = arith.constant 0 : i32
    return %c0_i32, %c0_i32_0 : i32, i32
  }
  func.func @transform_5(%arg0: i32, %arg1: i32) -> (i32, i32) {
    %c0_i32 = arith.constant 0 : i32
    %c0_i32_0 = arith.constant 0 : i32
    %c0_i32_1 = arith.constant 0 : i32
    return %c0_i32, %c0_i32_0 : i32, i32
  }
  func.func @transform_6(%arg0: i32, %arg1: i32) -> (i32, i32) {
    %c0_i32 = arith.constant 0 : i32
    %c0_i32_0 = arith.constant 0 : i32
    %c0_i32_1 = arith.constant 0 : i32
    return %c0_i32, %c0_i32_0 : i32, i32
  }
  func.func @transform_7(%arg0: i32, %arg1: i32) -> (i32, i32) {
    %c0_i32 = arith.constant 0 : i32
    %c0_i32_0 = arith.constant 0 : i32
    %c0_i32_1 = arith.constant 0 : i32
    return %c0_i32, %c0_i32_0 : i32, i32
  }
  func.func @transform_8(%arg0: i32, %arg1: i32) -> (i32, i32) {
    %c0_i32 = arith.constant 0 : i32
    %c0_i32_0 = arith.constant 0 : i32
    %c0_i32_1 = arith.constant 0 : i32
    return %c0_i32, %c0_i32_0 : i32, i32
  }
  func.func @transform_9(%arg0: i32, %arg1: i32) -> (i32, i32) {
    %c0_i32 = arith.constant 0 : i32
    %c0_i32_0 = arith.constant 0 : i32
    %c0_i32_1 = arith.constant 0 : i32
    return %c0_i32, %c0_i32_0 : i32, i32
  }
  func.func @transform_10(%arg0: i32, %arg1: i32) -> (i32, i32, i32, i32) {
    %c0_i32 = arith.constant 0 : i32
    %c0_i32_0 = arith.constant 0 : i32
    %c0_i32_1 = arith.constant 0 : i32
    return %arg0, %arg1, %c0_i32, %c0_i32_0 : i32, i32, i32, i32
  }
}

</mosaic_0001>

<bundles_post_ra>
// kernel: tpu_custom_call.1
= control target key start
LH: loop header
LB: loop body
LE: loop exit
PB: predicated region body
PF: predicated region fallthrough
CT: control target
= control target key end

     0   :  { %s1953_s0 = inlined_call_operand.vmem [shape: f32[2,2,8,162], index: 0, kind: input, shape index: {}]   ;;  %s1954_s1 = inlined_call_operand.hbm [shape: f32[2,2,16,128], index: 1, kind: input, shape index: {}]   ;;  %s1955_s2 = inlined_call_operand.vmem [shape: f32[16,4], index: 2, kind: input, shape index: {}]   ;;  %s1956_s3 = inlined_call_operand.vmem [shape: f32[16,4], index: 3, kind: input, shape index: {}]   ;;  %s1957_s4 = inlined_call_operand.vmem [shape: f32[16,16], index: 4, kind: input, shape index: {}]   ;;  %s1958_s5 = inlined_call_operand.vmem [shape: f32[16,1], index: 5, kind: input, shape index: {}]   ;;  %s1959_s6 = inlined_call_operand.hbm [shape: f32[16,16], index: 6, kind: input, shape index: {}]   ;;  %s1960_s7 = inlined_call_operand.vmem [shape: f32[16,1], index: 7, kind: input, shape index: {}]   ;;  %s1961_s8 = inlined_call_operand.vmem [shape: f32[4,16], index: 8, kind: input, shape index: {}]   ;;  %s1962_s9 = inlined_call_operand.vmem [shape: f32[4,1], index: 9, kind: input, shape index: {}]   ;;  %s1963_s10 = inlined_call_operand.hbm [shape: bf16[2,2,8,128], index: 10, kind: output, shape index: {}]  }
   0x1   :  { %1977 = sst [smem:[#allocation17_spill]] %s1957_s4 }
   0x2   :  { %1978 = sst [smem:[#allocation18_spill]] %s1958_s5 }
   0x3   :  { %1979 = sst [smem:[#allocation19_spill]] %s1959_s6 }
   0x4   :  { %1980 = sst [smem:[#allocation20_spill]] %s1960_s7 }
   0x5   :  { %1981 = sst [smem:[#allocation21_spill]] %s1961_s8 }
   0x6   :  { %1982 = sst [smem:[#allocation22_spill]] %s1962_s9 }
   0x7   :  { %1983 = sst [smem:[#allocation23_spill]] %s1963_s10 }
   0x8   :  { %15 = vsyncpa [#allocation4], 0 }
   0x9   :  { %17 = vsyncpa [#allocation4 + $0x1], 0 }
   0xa   :  { %18 = vsyncpa [#allocation7], 0 }
   0xb   :  { %19 = vsyncpa [#allocation5], 0 }
   0xc   :  { %21 = vsyncpa [#allocation5 + $0x1], 0  ;;  %s1631_s13 = smov 0   ;;  %s1633_s14 = smov 0  }
   0xd   :  { %s1635_s15 = smov 0   ;;  %s1637_s16 = smov 0  }
   0xe   :  { %s1639_s17 = smov 0   ;;  %s1641_s18 = smov 0  }
   0xf   :  { %s1643_s19 = smov 0   ;;  %s1645_s20 = smov 0  }
  0x10 LB: > { %1984 = sst [smem:[#allocation12_spill]] %s1534_s13  ;;  %s1228_s21 = sadd.s32 4294967295, %s1562_s20   ;;  %s1562_s20 = sphi %s1645_s20, %s27_s20   ;;  %s1558_s19 = sphi %s1643_s19, %s2025_s19   ;;  %s1554_s18 = sphi %s1641_s18, %s2020_s18   ;;  %s1550_s17 = sphi %s1639_s17, %s2024_s17   ;;  %s1546_s16 = sphi %s1637_s16, %s2019_s16   ;;  %s1542_s15 = sphi %s1635_s15, %s2023_s15   ;;  %s1538_s14 = sphi %s1633_s14, %s2022_s14   ;;  %s1534_s13 = sphi %s1631_s13, %s2021_s13  }
  0x11   : > { %1985 = sst [smem:[#allocation13_spill]] %s1554_s18  ;;  %s1229_s22 = sadd.s32 4294967294, %s1562_s20  }
  0x12   : > { %p89_p0 = scmp.ne.s32.totalorder %s1538_s14, %s1534_s13  ;;  %p1675_p1 = scmp.eq.s32.totalorder %s1228_s21, 0 }
  0x13   : > { %p1679_p2 = scmp.eq.s32.totalorder %s1228_s21, 3  ;;  %p289_p3 = scmp.eq.s32.totalorder %s1229_s22, 3 }
  0x14   : > { %p1685_p4 = por %p1675_p1, %p89_p0  ;;  %p1230_p5 = scmp.ge.s32.totalorder %s1562_s20, 1 }
  0x15   : > { %p1690_p6 = por %p289_p3, %p89_p0  ;;  %p296_p7 = scmp.lt.s32.totalorder %s1562_s20, 5 }
  0x16   : > { %s1988_s25 = scalar_select %p1685_p4, 1, 0 }
  0x17   : > { %s1989_s26 = scalar_select %p1690_p6, 1, 0 }
  0x18   : > { %p1695_p8 = pnand %p1230_p5, %p296_p7  ;;  %s1564_s28 = smov [#allocation6]  }
  0x19   : > { %1990 = sst [smem:[#allocation14_spill]] %s1989_s26  ;;  %s320_s29 = sshll.u32 %s1564_s28, 4  ;;  %s321_s29 = int_to_ptr.vmem [resolvable:$true] %s320_s29 }
  0x1a   : > { %p1316_p9 = pneg %p1695_p8  ;;  %s1419_s30 = scalar_lea.vmem %s321_s29, 256 }
  0x1b   : > { %p1420_p12 = scmp.ne.s32.totalorder %s321_s29, %s1419_s30  ;;  %p1427_p3 = scmp.lt.s32.totalorder %s321_s29, %s321_s29 }
  0x1c   : > { %p1317_p10 = pnand %p1316_p9, %p1675_p1  ;;  %p1428_p6 = scmp.lt.s32.totalorder %s1419_s30, %s1419_s30 }
  0x1e   : > { %p1410_p11 = pneg %p1317_p10  ;;  %p1429_p4 = por %p1428_p6, %p1427_p3 }
  0x20   : > { %p1422_p13 = pnand %p1420_p12, %p1410_p11 }
  0x22   : > { %p1423_p0 = pneg %p1422_p13 }
  0x24   : > { %p1430_p5 = pnand %p1429_p4, %p1423_p0 }
  0x26   : > { %1433 = shalt.err (!%p1430_p5)
}
  0x27   : > { %s1967_s11 = smov 128   ;;  %s1968_s12 = smov 8  }
  0x28   : > { %s1992_s6 = sld [smem:[#allocation19_spill]]  ;;  %s36_s28 = sadd.s32 1, %s1554_s18 }
  0x29   : > { %p37_p4 = scmp.ge.s32.totalorder %s36_s28, 2  ;;  %s39_s30 = sadd.s32 1, %s1558_s19 }
  0x2a   : > { %s76_s26 = sadd.s32 1, %s1542_s15  ;;  %p83_p6 = scmp.ne.s32.totalorder %s1542_s15, %s1538_s14 }
  0x2b   : > { %s2027_s28 = smov (%p37_p4, %s36_s28), 0  ;;  %s2029_s30 = smov (!%p37_p4, %s39_s30), %s1558_s19 }
  0x2c   : > { %1993 = sst [smem:[#allocation15_spill]] %s2027_s28  ;;  %s72_s13 = ssub.s32 %s1554_s18, %s2027_s28 }
  0x2d   : > { %p84_p7 = scmp.eq.s32.totalorder %s1562_s20, 0  ;;  %p41_p9 = scmp.ge.s32.totalorder %s2029_s30, 2 }
  0x2e   : > { %1319 = dma.hbm_to_vmem [thread:$0]  (!%p1317_p10), %s1992_s6, 256, %s321_s29, [#allocation7], %s1967_s11, %s1967_s11, %s1968_s12  }
  0x2f   : > { %p1722_p11 = por %p1679_p2, %p83_p6  ;;  %p1726_p10 = por %p84_p7, %p83_p6 }
  0x30   : > { %p1329_p12 = scmp.lt.s32.totalorder %s1562_s20, 4  ;;  %s2031_s30 = smov (%p41_p9, %s2029_s30), 0 }
  0x31   : > { %s1994_s21 = scalar_select %p1722_p11, 1, 0 }
  0x32   : > { %s355_s22 = sand.u32 1, %s1542_s15   ;;  %s1234_s11 = sshll.u32 %s1554_s18, 1 }
  0x33   : > { %1995 = sst [smem:[#allocation16_spill]] %s1994_s21  ;;  %s71_s12 = ssub.s32 %s1558_s19, %s2031_s30 }
  0x34   : > { %s73_s6 = sor.u32 %s72_s13, %s71_s12  ;;  %s1233_s28 = sshll.u32 %s355_s22, 4 }
  0x35   : > { %p74_p13 = scmp.eq.s32.totalorder %s73_s6, 0  ;;  %s1235_s24 = sshll.u32 %s1558_s19, 2 }
  0x36   : > { %s359_s10 = scalar_lea.vmem [#allocation3], %s1233_s28  ;;  %s365_s4 = sadd.s32 %s1235_s24, %s1234_s11 }
  0x37   : > { %s368_s8 = sshll.u32 %s359_s10, 4  ;;  %s1236_s9 = sshll.u32 %s365_s4, 7  ;;  %s369_s8 = int_to_ptr.vmem [resolvable:$true] %s368_s8 }
  0x38   : > { %s1739_s21 = scalar_select %p74_p13, %s1542_s15, %s76_s26  }
  0x39   : > { %p1745_p2 = pnand %p1329_p12, %p1726_p10  ;;  %s367_s13 = scalar_lea.hbm %s1954_s1, %s1236_s9 }
  0x3a   : > { %s356_s6 = scalar_lea.sflag [#allocation4], %s355_s22  ;;  %s1447_s10 = scalar_lea.vmem %s369_s8, 256 }
  0x3b   : > { %p1436_p0 = pneg %p1745_p2  ;;  %p1448_p3 = scmp.ne.s32.totalorder %s369_s8, %s1447_s10 }
  0x3c   : > { %s1567_s26 = smov [#allocation3]  }
  0x3d   : > { %p1450_p5 = pnand %p1448_p3, %p1436_p0  ;;  %s1452_s4 = sshll.u32 %s1567_s26, 4  ;;  %s1453_s4 = int_to_ptr.vmem [resolvable:$false] %s1452_s4 }
  0x3e   : > { %s1454_s11 = scalar_lea.vmem %s1453_s4, 512  ;;  %p1455_p6 = scmp.lt.s32.totalorder %s369_s8, %s1453_s4 }
  0x3f   : > { %p1451_p4 = pneg %p1450_p5  ;;  %p1456_p7 = scmp.lt.s32.totalorder %s1454_s11, %s1447_s10 }
  0x41   : > { %p1457_p9 = por %p1456_p7, %p1455_p6 }
  0x43   : > { %p1458_p10 = pnand %p1457_p9, %p1451_p4 }
  0x45   : > { %1461 = shalt.err (!%p1458_p10)
}
  0x46   : > { %s1998_s5 = smov 8   ;;  %s1999_s9 = smov 128  }
  0x47   : > { %1323 = dma.hbm_to_vmem [thread:$0]  (!%p1745_p2), %s367_s13, 256, %s369_s8, %s356_s6, %s1999_s9, %s1999_s9, %s1998_s5  }
  0x48   : > { %380 = sbr.rel (%p1695_p8) target bundleno = 991 (0x3df), region = 60  ;;  %s1762_s18 = sand.u32 (!%p1695_p8), 1, %s1538_s14  }
  0x49   : > { %s1238_s12 = sshll.u32 (!%p1695_p8), %s1762_s18, 4  ;;  %s383_s28 = scalar_lea.sflag (!%p1695_p8), [#allocation4], %s1762_s18 }
  0x4a   : > { %s1766_s29 = scalar_lea.vmem (!%p1695_p8), [#allocation3], %s1238_s12  ;;  %p2000_p12 = scmp.ne.s32.totalorder (!%p1695_p8), %s1988_s25, 0 }
  0x4d   : > { %1521 = dma.done.wait (%p2000_p12), %s383_s28, 256  }
  0x4e   : > { %1523 = vsyncadd (%p2000_p12), %s383_s28, 4294967040 }
  0x4f   : > { %1525 = dma.done.wait (%p1675_p1), [#allocation7], 256  }
  0x50   : > { %1527 = vsyncadd (%p1675_p1), [#allocation7], 4294967040  ;;  %p436_p8 = scmp.lt.s32.totalorder %s1550_s17, 1  ;;  %p438_p13 = scmp.lt.s32.totalorder %s1546_s16, 1  ;;  %v445_v8 = vlaneseq  ;;  %vm504_vm3 = vcmask 1031168   ;;  %vm490_vm4 = vcmask 1039360  }
  0x51   : > { %s1568_s26 = smov 126   ;;  %s1569_s23 = smov 127   ;;  %vm513_vm6 = vcmask 261120   ;;  %vm577_vm7 = vcmask 1043456   ;;  %vm640_vm8 = vcmask 31744   ;;  %vm598_vm9 = vcmask 916480  }
  0x52   : > { %s437_s7 = scalar_select %p436_p8, %s1550_s17, 1  ;;  %v446_v9 = vand.u32 127, %v445_v8  ;;  %vm613_vm10 = vcmask 785408   ;;  %vm810_vm11 = vcmask 130048   ;;  %vm1574_vm12 = vmmov 0  }
  0x53   : > { %s439_s8 = scalar_select %p438_p13, %s1546_s16, 1 }
  0x54   : > { %s1242_s27 = sshll.u32 %s437_s7, 2  ;;  %v447_v10 = vadd.s32 128, %v446_v9  ;;  %v452_v12 = vand.u32 15, %v446_v9  ;;  %s1570_s4 = smov 112  }
  0x55   : > { %s1241_s22 = sshll.u32 %s439_s8, 1  ;;  %s1571_s11 = smov 96  }
  0x56   : > { %s442_s24 = sadd.s32 %s1242_s27, %s1241_s22  ;;  %v459_v11 = vand.u32 15, %v447_v10  ;;  %vm1787_vm1 = vcmp.ne.s32.totalorder %v452_v12, 0  ;;  %vm1797_vm5 = vcmp.ne.s32.totalorder %v452_v12, 15  ;;  %s2009_s27 = sld [smem:[#allocation18_spill]] }
  0x57   : > { %s1243_s13 = sshll.u32 %s442_s24, 3  ;;  %s2010_s6 = sld [smem:[#allocation20_spill]] }
  0x58   : > { %s444_s10 = scalar_lea.vmem %s1953_s0, %s1243_s13  ;;  %vm1783_vm0 = vcmp.ne.s32.totalorder %v459_v11, 0  ;;  %vm1791_vm2 = vcmp.ne.s32.totalorder %v459_v11, 15  ;;  %s2012_s22 = sld [smem:[#allocation17_spill]] }
  0x59   : > { %v476_v0 = vld [vmem:[%s444_s10] sm:$0xff]  ;;  %v477_v1 = vld [vmem:[%s444_s10 + $0x8] sm:$0xff]  ;;  %s2013_s10 = sld [smem:[#allocation21_spill]] }
  0x5a   : > { %500 = vrot.lane.b32.xlu1 %v476_v0, %s1568_s26  ;;  %486 = vrot.lane.b32.xlu0 %v476_v0, %s1569_s23  ;;  %v546_v2 = vmul.f32 %v477_v1, %v477_v1  ;;  %v545_v3 = vmul.f32 %v476_v0, %v476_v0  ;;  %v516_v4 = vrot.slane %v477_v1, 4  ;;  %v515_v5 = vrot.slane %v476_v0, 4  ;;  %s2015_s8 = sld [smem:[#allocation23_spill]] }
  0x5b   : > { %v483_v18 = vsel %vm1783_vm0, %v477_v1, 0.0  ;;  %v482_v20 = vsel %vm1787_vm1, %v476_v0, 0.0 }
  0x5c   : > { %v520_v6 = vmul.f32 %v516_v4, %v477_v1  ;;  %v519_v7 = vmul.f32 %v515_v5, %v476_v0  ;;  %v548_v35 = vsel %vm1783_vm0, %v546_v2, 0.0  ;;  %v547_v37 = vsel %vm1787_vm1, %v545_v3, 0.0  ;;  %v895_v4 = vld [vmem:[%s2009_s27 + $0x8] sm:$0xff] }
  0x5d   : > { %v1572_v5 = vmov 0  }
  0x5e   : > { %502 = vrot.lane.b32.xlu1 %v477_v1, %s1568_s26  ;;  %488 = vrot.lane.b32.xlu0 %v477_v1, %s1569_s23  ;;  %v522_v46 = vsel %vm1783_vm0, %v520_v6, 0.0  ;;  %v521_v48 = vsel %vm1787_vm1, %v519_v7, 0.0  ;;  %v636_v1 = vld [vmem:[%s1956_s3] sm:$0xff] }
  0x5f   : > { %1279 = vmatprep.mubr.msk.f32.mxu0 %vm640_vm8, %v636_v1  ;;  %1407 = vset.pattern.permute.xlu1 %v1572_v5 }
  0x60   : > { %1406 = vset.pattern.permute.xlu0 %v1572_v5 }
  0x62   : > { %553 = vrot.lane.b32.xlu1 %v546_v2, %s1569_s23  ;;  %551 = vrot.lane.b32.xlu0 %v545_v3, %s1569_s23 }
  0x66   : > { %562 = vrot.lane.b32.xlu1 %v546_v2, %s1568_s26  ;;  %560 = vrot.lane.b32.xlu0 %v545_v3, %s1568_s26  ;;  %v634_v2 = vld [vmem:[%s1955_s2] sm:$0xff] }
  0x67   : > { %1284 = vmatprep.mubr.msk.f32.mxu1 %vm640_vm8, %v634_v2  ;;  %v894_v3 = vld [vmem:[%s2009_s27] sm:$0xff] }
  0x6a   : > { %527 = vrot.lane.b32.xlu1 %v520_v6, %s1569_s23  ;;  %525 = vrot.lane.b32.xlu0 %v519_v7, %s1569_s23  ;;  %s1256_s23 = sshll.u32 %s1550_s17, 1  ;;  %s1096_s17 = scalar_lea.sflag [#allocation5], %s1762_s18 }
  0x6e   : > { %536 = vrot.lane.b32.xlu1 %v520_v6, %s1568_s26  ;;  %534 = vrot.lane.b32.xlu0 %v519_v7, %s1568_s26  ;;  %v913_v6 = vld [vmem:[%s2010_s6 + $0x8] sm:$0xff]  ;;  %v912_v7 = vld [vmem:[%s2010_s6] sm:$0xff]  ;;  %s1240_s26 = sshll.u32 %s1762_s18, 2 }
  0x6f   : > { %s435_s9 = scalar_lea.vmem [#allocation8], %s1240_s26 }
  0x70   : > { %s1111_s12 = sshll.u32 %s435_s9, 4  ;;  %s1112_s12 = int_to_ptr.vmem [resolvable:$true] %s1111_s12 }
  0x71   : > { %s1462_s13 = scalar_lea.vmem %s1112_s12, 64 }
  0x72   : > { %p1463_p1 = scmp.ne.s32.totalorder %s1112_s12, %s1462_s13 }
  0x74   : > { %p1464_p2 = pnand %p1463_p1, %p1722_p11 }
  0x76   : > { %p1465_p0 = pneg %p1464_p2 }
  0xcc   : > { %v501_v14 = vpop.permute.xlu1 %500  ;;  %v487_v15 = vpop.permute.xlu0 %486 }
  0xd0   : > { %v503_v21 = vpop.permute.xlu1 %502  ;;  %v489_v22 = vpop.permute.xlu0 %488 }
  0xd1   : > { %v505_v23 = vsel %vm504_vm3, %v501_v14, %v503_v21  ;;  %v509_v24 = vsel %vm1791_vm2, %v503_v21, 0.0  ;;  %v491_v25 = vsel %vm490_vm4, %v487_v15, %v489_v22  ;;  %v495_v26 = vadd.f32 %v489_v22, %v483_v18 }
  0xd2   : > { %v508_v27 = vsel %vm1797_vm5, %v505_v23, 0.0  ;;  %v494_v28 = vadd.f32 %v491_v25, %v482_v20 }
  0xd3   : > { %v511_v29 = vadd.f32 %v509_v24, %v495_v26 }
  0xd4   : > { %v1809_v30 = vadd.f32 %v508_v27, %v494_v28  ;;  %v554_v31 = vpop.permute.xlu1 %553  ;;  %v552_v32 = vpop.permute.xlu0 %551 }
  0xd5   : > { %514 = vst.msk [vmem:[#allocation2 + $0x8] sm:$0xff] %vm513_vm6, %v511_v29  ;;  %v555_v38 = vsel %vm490_vm4, %v552_v32, %v554_v31  ;;  %v559_v40 = vadd.f32 %v554_v31, %v548_v35  ;;  %v637_v35 = vld [vmem:[%s1956_s3 + $0x8] sm:$0xff] }
  0xd6   : > { %590 = vrot.lane.b32.xlu0 %v1809_v30, %s1570_s4  ;;  %v558_v45 = vadd.f32 %v555_v38, %v547_v37  ;;  %v808_v37 = vld [vmem:[%s2012_s22] sm:$0xff] }
  0xd7   : > { %v632_v38 = vld [vmem:[%s1766_s29] sm:$0xff] }
  0xd8   : > { %v563_v33 = vpop.permute.xlu1 %562  ;;  %v561_v34 = vpop.permute.xlu0 %560 }
  0xd9   : > { %v564_v36 = vsel %vm504_vm3, %v561_v34, %v563_v33  ;;  %v568_v39 = vsel %vm1791_vm2, %v563_v33, 0.0  ;;  %v635_v33 = vld [vmem:[%s1955_s2 + $0x8] sm:$0xff] }
  0xda   : > { %605 = vrot.lane.b32.xlu0 %v1809_v30, %s1571_s11  ;;  %v567_v41 = vsel %vm1797_vm5, %v564_v36, 0.0  ;;  %v570_v47 = vadd.f32 %v568_v39, %v559_v40  ;;  %v633_v36 = vld [vmem:[%s1766_s29 + $0x8] sm:$0xff]  ;;  %v910_v40 = vld [vmem:[#allocation6] sm:$0xff] }
  0xdb   : > { %v569_v50 = vadd.f32 %v567_v41, %v558_v45  ;;  %v809_v39 = vld [vmem:[%s2012_s22 + $0x8] sm:$0xff] }
  0xdc   : > { %v528_v42 = vpop.permute.xlu1 %527  ;;  %v526_v43 = vpop.permute.xlu0 %525  ;;  %v584_v44 = vld [vmem:[#allocation2 + $0x8] sm:$0xff]  ;;  %v574_v57 = vrot.slane %v570_v47, 4 }
  0xdd   : > { %592 = vrot.lane.b32.xlu1 %v584_v44, %s1570_s4  ;;  %v529_v49 = vsel %vm490_vm4, %v526_v43, %v528_v42  ;;  %v533_v51 = vadd.f32 %v528_v42, %v522_v46  ;;  %v573_v60 = vrot.slane %v569_v50, 4 }
  0xde   : > { %v532_v54 = vadd.f32 %v529_v49, %v521_v48 }
  0xe0   : > { %v537_v52 = vpop.permute.xlu1 %536  ;;  %v535_v53 = vpop.permute.xlu0 %534 }
  0xe1   : > { %v542_v55 = vsel %vm1791_vm2, %v537_v52, 0.0  ;;  %v538_v56 = vsel %vm504_vm3, %v535_v53, %v537_v52  ;;  %607 = vrot.lane.b32.xlu1 %v584_v44, %s1571_s11 }
  0xe2   : > { %v544_v58 = vadd.f32 %v542_v55, %v533_v51  ;;  %v541_v59 = vsel %vm1797_vm5, %v538_v56, 0.0 }
  0xe3   : > { %v543_v61 = vadd.f32 %v541_v59, %v532_v54 }
  0xe4   : > { %v579_v62 = vsel %vm577_vm7, %v544_v58, %v574_v57  ;;  %v911_v57 = vld [vmem:[#allocation6 + $0x8] sm:$0xff]  ;;  %v1573_v58 = vmov 0.0  }
  0xe5   : > { %581 = vst.msk [vmem:[#allocation2 + $0x18] sm:$0xff] %vm513_vm6, %v579_v62  ;;  %v578_v63 = vsel %vm577_vm7, %v543_v61, %v573_v60 }
  0xe6   : > { %594 = vrot.lane.b32.xlu0 %v578_v63, %s1570_s4 }
  0xea   : > { %609 = vrot.lane.b32.xlu0 %v578_v63, %s1571_s11 }
  0xec   : > { %v585_v0 = vld [vmem:[#allocation2 + $0x18] sm:$0xff] }
  0xed   : > { %596 = vrot.lane.b32.xlu1 %v585_v0, %s1570_s4 }
  0xee   : > { %903 = vperm.xlu0 %1406, %v895_v4  }
  0xf1   : > { %611 = vrot.lane.b32.xlu1 %v585_v0, %s1571_s11  ;;  %s2011_s11 = sld [smem:[#allocation22_spill]] }
  0xf2   : > { %916 = vperm.xlu0 %1406, %v912_v7  }
  0xf5   : > { %898 = vperm.xlu1 %1407, %v894_v3   ;;  %v1007_v3 = vld [vmem:[%s2013_s10] sm:$0xf] }
  0xf7   : > { %v1008_v8 = vld [vmem:[%s2011_s11] sm:$0xf]  ;;  %s1107_s11 = sadd.s32 %s1546_s16, %s1256_s23  ;;  %s1575_s16 = smov [#allocation8]  }
  0xf8   : > { %s1257_s5 = sshll.u32 %s1107_s11, 6  ;;  %s1466_s29 = sshll.u32 %s1575_s16, 4  ;;  %s1467_s29 = int_to_ptr.vmem [resolvable:$false] %s1466_s29 }
  0xf9   : > { %921 = vperm.xlu1 %1407, %v913_v6   ;;  %s1109_s24 = scalar_lea.hbm %s2015_s8, %s1257_s5  ;;  %s1468_s25 = scalar_lea.vmem %s1467_s29, 128 }
  0xfa   : > { %p1469_p3 = scmp.lt.s32.totalorder %s1112_s12, %s1467_s29  ;;  %p1470_p5 = scmp.lt.s32.totalorder %s1468_s25, %s1462_s13 }
  0xfc   : > { %p1471_p4 = por %p1470_p5, %p1469_p3 }
  0xfd   : > { %1011 = vperm.xlu1 %1407, %v1008_v8  }
  0xfe   : > { %p1472_p6 = pnand %p1471_p4, %p1465_p0 }
 0x148   : > { %v591_v10 = vpop.permute.xlu0 %590 }
 0x14c   : > { %v606_v13 = vpop.permute.xlu0 %605 }
 0x14f   : > { %v593_v9 = vpop.permute.xlu1 %592 }
 0x150   : > { %v599_v12 = vsel %vm598_vm9, %v591_v10, %v593_v9 }
 0x151   : > { %v603_v15 = vadd.f32 %v599_v12, %v1809_v30 }
 0x153   : > { %v608_v11 = vpop.permute.xlu1 %607 }
 0x154   : > { %v614_v14 = vsel %vm613_vm10, %v606_v13, %v608_v11 }
 0x155   : > { %v618_v16 = vadd.f32 %v614_v14, %v603_v15 }
 0x157   : > { %v1869_v18 = vmul.f32 0.11111111, %v618_v16 }
 0x158   : > { %v595_v17 = vpop.permute.xlu0 %594 }
 0x159   : > { %v623_v24 = vrot.slane %v1869_v18, 4  ;;  %v627_v25 = vmul.f32 %v1869_v18, %v1869_v18 }
 0x15b   : > { %v625_v29 = vmul.f32 %v623_v24, %v1869_v18  ;;  %v629_v30 = vrot.slane %v627_v25, 4 }
 0x15c   : > { %v610_v23 = vpop.permute.xlu0 %609 }
 0x15f   : > { %v597_v19 = vpop.permute.xlu1 %596 }
 0x160   : > { %v600_v20 = vsel %vm598_vm9, %v595_v17, %v597_v19 }
 0x161   : > { %v604_v21 = vadd.f32 %v600_v20, %v578_v63 }
 0x163   : > { %v612_v22 = vpop.permute.xlu1 %611 }
 0x164   : > { %v615_v26 = vsel %vm613_vm10, %v610_v23, %v612_v22 }
 0x165   : > { %v619_v27 = vadd.f32 %v615_v26, %v604_v21 }
 0x167   : > { %v621_v28 = vmul.f32 0.11111111, %v619_v27 }
 0x169   : > { %v626_v31 = vsub.f32 %v621_v28, %v625_v29  ;;  %v631_v32 = vsub.f32 %v621_v28, %v629_v30  ;;  %v904_v49 = vpop.permute.xlu0 %903 }
 0x16b   : > { %1282 = vmatprep.subr.msk.mxu1 %vm577_vm7, %v626_v31  ;;  %v639_v34 = vrot.slane %v631_v32, 4 }
 0x16c   : > { %1283 = vmatpush3.msk.msra.mxu1 %vm577_vm7, %v626_v31 }
 0x16d   : > { %1277 = vmatprep.subr.msk.mxu0 %vm577_vm7, %v639_v34  ;;  %1285 = vmatmul.mubr.msk.f32.vlgmr.msra.gmra.mxu1 %vm640_vm8, %v635_v33  ;;  %v917_v62 = vpop.permute.xlu0 %916 }
 0x16e   : > { %1278 = vmatpush3.msk.msra.mxu0 %vm577_vm7, %v639_v34  ;;  %1298 = vmatprep.mubr.msk.f32.mxu1 %vm810_vm11, %v910_v40 }
 0x16f   : > { %1280 = vmatmul.mubr.msk.f32.vlgmr.msra.gmra.mxu0 %vm640_vm8, %v637_v35  ;;  %1287 = vmatprep.subr.mxu0 %v633_v36 }
 0x170   : > { %1288 = vmatpush3.msra.mxu0 %v633_v36  ;;  %1291 = vmatprep.mubr.msk.f32.mxu0 %vm810_vm11, %v808_v37  ;;  %v899_v53 = vpop.permute.xlu1 %898 }
 0x171   : > { %1289 = vmatprep.subr.mxu0 %v632_v38 }
 0x172   : > { %1290 = vmatpush3.msra.mxu0 %v632_v38 }
 0x173   : > { %1292 = vmatmul.mubr.msk.f32.vlgmr.msra.gmra.mxu0 %vm810_vm11, %v809_v39  ;;  %1301 = vmatprep.subr.mxu0 %v1573_v58 }
 0x174   : > { %1305 = vmatprep.mubr.msk.f32.mxu0 %vm1574_vm12, %v1573_v58  ;;  %v922_v59 = vpop.permute.xlu1 %921 }
 0x178   : > { %v1012_v4 = vpop.permute.xlu1 %1011 }
 0x22d   : > { %v1286_v41 = vpop.f32.mrf.mxu1 }
 0x22f   : > { %v1281_v42 = vpop.f32.mrf.mxu0  ;;  %v799_v44 = vpop.f32.mrf.mxu1 }
 0x230   : > { %v805_v45 = vadd.f32 %v1286_v41, %v1281_v42 }
 0x231   : > { %v715_v43 = vpop.f32.mrf.mxu0 }
 0x232   : > { %v800_v47 = vadd.f32 %v799_v44, %v715_v43 }
 0x233   : > { %v1293_v46 = vpop.f32.mrf.mxu0 }
 0x234   : > { %v893_v48 = vadd.f32 %v1293_v46, %v805_v45 }
 0x235   : > { %v883_v50 = vpop.f32.mrf.mxu0 }
 0x236   : > { %v907_v51 = vadd.f32 %v904_v49, %v893_v48  ;;  %v892_v52 = vadd.f32 %v883_v50, %v800_v47 }
 0x238   : > { %v909_v54 = vmax.f32 %v907_v51, 0.0  ;;  %v906_v55 = vadd.f32 %v899_v53, %v892_v52 }
 0x23a   : > { %v908_v56 = vmax.f32 %v906_v55, 0.0  ;;  %1294 = vmatprep.subr.mxu1 %v909_v54 }
 0x23b   : > { %1295 = vmatpush3.msra.mxu1 %v909_v54 }
 0x23c   : > { %1296 = vmatprep.subr.mxu1 %v908_v56 }
 0x23d   : > { %1297 = vmatpush3.msra.mxu1 %v908_v56 }
 0x23e   : > { %1299 = vmatmul.mubr.msk.f32.vlgmr.msra.gmra.mxu1 %vm810_vm11, %v911_v57 }
 0x2fe   : > { %v1300_v60 = vpop.f32.mrf.mxu1 }
 0x2ff   : > { %v1002_v61 = vadd.f32 %v1300_v60, %v922_v59 }
 0x300   : > { %v996_v63 = vpop.f32.mrf.mxu1 }
 0x301   : > { %v1006_v0 = vmax.f32 %v1002_v61, 0.0  ;;  %v997_v1 = vadd.f32 %v996_v63, %v917_v62 }
 0x303   : > { %v1005_v2 = vmax.f32 %v997_v1, 0.0  ;;  %1302 = vmatpush3.msra.mxu0 %v1006_v0 }
 0x304   : > { %1303 = vmatprep.subr.mxu0 %v1573_v58 }
 0x305   : > { %1304 = vmatpush3.msra.mxu0 %v1005_v2 }
 0x306   : > { %1306 = vmatmul.mubr.msk.f32.vlgmr.msra.gmra.mxu0 %vm810_vm11, %v1007_v3 }
 0x3c6   : > { %v1083_v5 = vpop.f32.mrf.mxu0 }
 0x3c7   : > { %v1084_v6 = vadd.f32 %v1083_v5, %v1012_v4 }
 0x3c8   : > { %v1307_v7 = vpop.f32.mrf.mxu0 }
 0x3c9   : > { %v1087_v8 = vmul.f32 %v1084_v6, %v1869_v18 }
 0x3cb   : > { %v1089_v9 = vrot.slane %v1087_v8, 4 }
 0x3cd   : > { %v1091_v10 = vsub.f32 %v1869_v18, %v1089_v9 }
 0x3cf   : > { %v1092_v11 = vsel %vm577_vm7, %v1084_v6, %v1091_v10 }
 0x3d0   : > { %v1093_v12 = vpack.c.bf16 %v1092_v11, %v1092_v11 }
 0x3d2   : > { %1094 = vst [vmem:[%s435_s9] sm:$0xf] %v1093_v12 }
 0x3d3   : > { %1475 = shalt.err (!%p1472_p6)
}
 0x3d4   : > { %s1476_s10 = scalar_lea.hbm %s1109_s24, 64  ;;  %s1480_s23 = scalar_lea.hbm %s2015_s8, 256 }
 0x3d5   : > { %p1477_p7 = scmp.ne.s32.totalorder %s1109_s24, %s1476_s10  ;;  %p1481_p12 = scmp.lt.s32.totalorder %s1109_s24, %s2015_s8 }
 0x3d6   : > { %p1482_p8 = scmp.lt.s32.totalorder %s1480_s23, %s1476_s10 }
 0x3d7   : > { %p1478_p9 = pnand %p1477_p7, %p1722_p11 }
 0x3d8   : > { %p1483_p13 = por %p1482_p8, %p1481_p12 }
 0x3d9   : > { %p1479_p10 = pneg %p1478_p9 }
 0x3db   : > { %p1484_p1 = pnand %p1483_p13, %p1479_p10 }
 0x3dd   : > { %1487 = shalt.err (!%p1484_p1)
}
 0x3de   : > { %1314 = dma.vmem_to_hbm [thread:$0]  (%p1722_p11), %s1112_s12, 64, %s1109_s24, %s1096_s17  }
 0x3df PF: > { %s2016_s9 = sld [smem:[#allocation12_spill]]  ;;  %p1331_p2 = scmp.ge.s32.totalorder %s1562_s20, 2 }
 0x3e0   : > { %s2017_s28 = sld [smem:[#allocation14_spill]] }
 0x3e5   : > { %s1123_s7 = sand.u32 1, %s2016_s9  }
 0x3e6   : > { %p2018_p0 = scmp.ne.s32.totalorder %s2017_s28, 0  ;;  %s1124_s13 = scalar_lea.sflag [#allocation5], %s1123_s7 }
 0x3e8   : > { %p1325_p3 = pnand %p1331_p2, %p2018_p0 }
 0x3ea   : > { %p1326_p5 = pneg %p1325_p3 }
 0x3ec   : > { %1529 = dma.done.wait (%p1326_p5), %s1124_s13, 64  }
 0x3ed   : > { %1531 = vsyncadd (%p1326_p5), %s1124_s13, 4294967232  ;;  %s27_s20 = sadd.s32 1, %s1562_s20   ;;  %s2019_s16 = sld [smem:[#allocation13_spill]] }
 0x3ee   : > { %p24_p4 = scmp.ge.s32.totalorder %s27_s20, 6   ;;  %s2020_s18 = sld [smem:[#allocation15_spill]] }
 0x3ef   : > { %s2021_s13 = smov %s1538_s14  ;;  %s2022_s14 = smov %s1542_s15 }
 0x3f0   : > { %s2023_s15 = smov %s1739_s21  ;;  %s2024_s17 = smov %s1558_s19 }
 0x3f1   : > { %s2025_s19 = smov %s2031_s30  ;;  %26 = sbr.rel (!%p24_p4) target bundleno = 16 (0x10), region = 112 }
 0x3f6   :  { %1129 = vsyncpa [#allocation4], 1 }
 0x3f7   :  { %1131 = vsyncpa [#allocation4 + $0x1], 1 }
 0x3f8   :  { %1132 = vsyncpa [#allocation7], 1 }
 0x3f9   :  { %1133 = vsyncpa [#allocation5], 1 }
 0x3fa   :  { %1135 = vsyncpa [#allocation5 + $0x1], 1 }

</bundles_post_ra>
